<compile_context>
chip_gen: v7x
topology: tpu7x:2x2x1
jax: 0.10.0
libtpu: 0.0.40
codegen_flags: <defaults>
</compile_context>

<pallas_src>
import functools
import math

import jax
import jax.numpy as jnp
from jax.experimental import pallas as pl
from jax.experimental.pallas import tpu as pltpu


def _pe_add_sliced_kernel(pe_ref, x_ref, o_ref, *, batch, d_model, acc_dtype):
    # pe_ref: (ts, D)        x_ref / o_ref: (ts, B*D), D % 128 == 0
    pe_tile = pe_ref[...].astype(acc_dtype)                     # loaded once per tile
    for b in range(batch):                                      # static loop, lane-aligned slices
        cols = pl.ds(b * d_model, d_model)
        o_ref[:, cols] = (x_ref[:, cols].astype(acc_dtype) + pe_tile).astype(o_ref.dtype)


def _pe_add_full_kernel(pe_ref, x_ref, o_ref, *, acc_dtype):
    # pe_ref / x_ref / o_ref: (ts, B*D) -- pe pre-broadcast over batch in the wrapper.
    o_ref[...] = (x_ref[...].astype(acc_dtype)
                  + pe_ref[...].astype(acc_dtype)).astype(o_ref.dtype)


def make_pe_table(max_len: int, d_model: int) -> jnp.ndarray:
    """Replicates the torch buffer: shape [max_len, 1, d_model], float32."""
    position = jnp.arange(0, max_len, dtype=jnp.float32)[:, None]            # [L, 1]
    div_term = jnp.exp(
        jnp.arange(0, d_model, 2, dtype=jnp.float32) * (-math.log(10000.0) / d_model)
    )                                                                         # [D/2]
    angles = position * div_term                                              # [L, D/2]
    pe = jnp.zeros((max_len, d_model), dtype=jnp.float32)
    pe = pe.at[:, 0::2].set(jnp.sin(angles))
    pe = pe.at[:, 1::2].set(jnp.cos(angles))
    return pe[:, None, :]                                                     # [L, 1, D]


def _vmem_limit_bytes() -> int:
    """Half the chip's physical VMEM, capped at 64 MiB (safe on v5e/v6e/v7x)."""
    try:
        cap = int(pltpu.get_tpu_info().vmem_capacity_bytes)
    except Exception:
        cap = 64 * 1024 * 1024
    return int(min(cap // 2, 64 * 1024 * 1024))


def positional_encoding_forward(x: jnp.ndarray,
                                pe: jnp.ndarray,
                                scale: jnp.ndarray,
                                *,
                                tile_bytes: int | None = None,
                                min_blocks: int = 2,
                                compute_in_fp32: bool = True,
                                alias_x_to_out: bool = False) -> jnp.ndarray:
    """x: [S, B, D]; pe: [max_len, 1, D] f32; scale: (1,) f32."""
    S, B, D = x.shape
    BD = B * D

    vmem_limit = _vmem_limit_bytes()
    if tile_bytes is None:
        tile_bytes = max(1 << 20, vmem_limit // 16)          # ~2 MiB (v7x) .. 4 MiB (v5e/v6e)

    acc_dtype = jnp.float32 if (compute_in_fp32 or x.dtype == jnp.float32) else x.dtype

    # Fold scale into the pe rows once in the wrapper (tiny S x D op).
    pe_rows = scale.reshape(()).astype(jnp.float32) * pe[:S, 0, :].astype(jnp.float32)

    per_slice = (D % 128 == 0)
    if per_slice:
        pe_in = pe_rows.astype(acc_dtype)                                     # (S, D)
        pe_cols = D
        kernel = functools.partial(_pe_add_sliced_kernel,
                                   batch=B, d_model=D, acc_dtype=acc_dtype)
    else:
        # Fallback for d_model not a multiple of 128: pre-broadcast pe over batch
        # so the kernel stays a plain tile+tile add (no masked mid-row slicing).
        pe_in = jnp.broadcast_to(pe_rows[:, None, :], (S, B, D)) \
                   .reshape(S, BD).astype(acc_dtype)                          # (S, B*D)
        pe_cols = BD
        kernel = functools.partial(_pe_add_full_kernel, acc_dtype=acc_dtype)

    # Lane-dense 2-D view of x: columns are b*D + d (contiguous [S, B, D] layout).
    x2 = x.reshape(S, BD)

    # Row tiling: ~tile_bytes per x-tile, multiple of 8 rows, and at least
    # `min_blocks` blocks (so the "parallel" axis can shard across v7x's 2 TCs).
    itemsize = jnp.dtype(x.dtype).itemsize
    if S <= 8:
        ts = S
    else:
        rows = max(8, (tile_bytes // max(1, BD * itemsize)) // 8 * 8)
        cap = max(8, (S // max(1, min_blocks)) // 8 * 8)
        ts = max(8, min(rows, cap, (S // 8) * 8))
    num_blocks = pl.cdiv(S, ts)   # tail block (if any) is masked on writeback

    out2 = pl.pallas_call(
        kernel,
        out_shape=jax.ShapeDtypeStruct((S, BD), x.dtype),
        grid_spec=pltpu.PrefetchScalarGridSpec(
            num_scalar_prefetch=0,
            grid=(num_blocks,),
            in_specs=[
                pl.BlockSpec((ts, pe_cols), lambda i: (i, 0)),   # pe tile (pipelined)
                pl.BlockSpec((ts, BD), lambda i: (i, 0)),        # x tile
            ],
            out_specs=pl.BlockSpec((ts, BD), lambda i: (i, 0)),
        ),
        compiler_params=pltpu.CompilerParams(
            dimension_semantics=("parallel",),
            vmem_limit_bytes=vmem_limit,
        ),
        input_output_aliases=({1: 0} if alias_x_to_out else {}),
    )(pe_in, x2)

    # Dropout (p=0.1) in eval mode is the identity.
    return out2.reshape(S, B, D)


if __name__ == "__main__":
    key = jax.random.PRNGKey(0)
    scale = jnp.full((1,), 1.25, dtype=jnp.float32)   # nn.Parameter(torch.ones(1)) analogue

    # (seq_len, d_model, batch, dtype, tile_bytes, compute_in_fp32, tol)
    cases = (
        # multi-block grid with a masked tail block (S=20, 8-row tiles), lane-aligned D
        (20, 128, 2, jnp.float32, 8 * 2 * 128 * 4, True, 1e-5),
        # auto tile size (single/few blocks), lane-aligned D
        (16, 128, 2, jnp.float32, None, True, 1e-5),
        # d_model not a multiple of 128 -> pre-broadcast fallback path
        (12, 64, 3, jnp.float32, None, True, 1e-5),
        # bf16 I/O with bf16 compute path (v6e/v7x style)
        (16, 128, 2, jnp.bfloat16, None, False, 2e-2),
    )

    for seq_len, d_model, batch, dtype, tile_bytes, in_f32, tol in cases:
        pe = make_pe_table(64, d_model)
        kx = jax.random.fold_in(key, seq_len * 1000 + d_model + batch)
        x = jax.random.normal(kx, (seq_len, batch, d_model), dtype=jnp.float32).astype(dtype)

        ref = (x.astype(jnp.float32) + scale[0] * pe[:seq_len]).astype(jnp.float32)

        out = positional_encoding_forward(
            x, pe, scale, tile_bytes=tile_bytes, compute_in_fp32=in_f32)
        out = jax.block_until_ready(out)

        assert out.shape == (seq_len, batch, d_model)
        assert out.dtype == dtype
        assert jnp.allclose(out.astype(jnp.float32), ref, atol=tol, rtol=tol), \
            (seq_len, d_model, batch, str(dtype))

    print("KERNEL_OK")
</pallas_src>

<mosaic_0001>
module attributes {stable_mosaic.version = 11 : i64} {
  func.func @_pe_add_sliced_kernel(%arg0: i32, %arg1: memref<8x128xf32, #tpu.memory_space<vmem>>, %arg2: memref<8x256xf32, #tpu.memory_space<vmem>>, %arg3: memref<8x256xf32, #tpu.memory_space<vmem>>) attributes {dimension_semantics = [#tpu.dimension_semantics<parallel>], iteration_bounds = array<i64: 3>, scalar_prefetch = 0 : i64, scratch_operands = 0 : i64, tpu.core_type = #tpu.core_type<tc>, window_params = [{transform_indices = @transform_0, window_bounds = array<i64: 8, 128>}, {transform_indices = @transform_1, window_bounds = array<i64: 8, 256>}, {transform_indices = @transform_2, window_bounds = array<i64: 8, 256>}]} {
    %c0 = arith.constant 0 : index
    %c0_0 = arith.constant 0 : index
    %0 = vector.load %arg1[%c0, %c0_0] : memref<8x128xf32, #tpu.memory_space<vmem>>, vector<8x128xf32>
    %c0_1 = arith.constant 0 : index
    %c0_2 = arith.constant 0 : index
    %1 = vector.load %arg2[%c0_1, %c0_2] : memref<8x256xf32, #tpu.memory_space<vmem>>, vector<8x128xf32>
    %2 = arith.addf %1, %0 : vector<8x128xf32>
    %c0_3 = arith.constant 0 : index
    %c0_4 = arith.constant 0 : index
    %3 = vector.load %arg3[%c0_3, %c0_4] : memref<8x256xf32, #tpu.memory_space<vmem>>, vector<8x128xf32>
    tpu.vector_store %arg3[%c0_3, %c0_4], %2 {strides = array<i32>} : memref<8x256xf32, #tpu.memory_space<vmem>>, vector<8x128xf32>,
    %c0_5 = arith.constant 0 : index
    %c128 = arith.constant 128 : index
    %4 = vector.load %arg2[%c0_5, %c128] : memref<8x256xf32, #tpu.memory_space<vmem>>, vector<8x128xf32>
    %5 = arith.addf %4, %0 : vector<8x128xf32>
    %c0_6 = arith.constant 0 : index
    %c128_7 = arith.constant 128 : index
    %6 = vector.load %arg3[%c0_6, %c128_7] : memref<8x256xf32, #tpu.memory_space<vmem>>, vector<8x128xf32>
    tpu.vector_store %arg3[%c0_6, %c128_7], %5 {strides = array<i32>} : memref<8x256xf32, #tpu.memory_space<vmem>>, vector<8x128xf32>,
    return
  }
  func.func @transform_0(%arg0: i32) -> (i32, i32) {
    %c0_i32 = arith.constant 0 : i32
    %c0_i32_0 = arith.constant 0 : i32
    return %arg0, %c0_i32 : i32, i32
  }
  func.func @transform_1(%arg0: i32) -> (i32, i32) {
    %c0_i32 = arith.constant 0 : i32
    %c0_i32_0 = arith.constant 0 : i32
    return %arg0, %c0_i32 : i32, i32
  }
  func.func @transform_2(%arg0: i32) -> (i32, i32) {
    %c0_i32 = arith.constant 0 : i32
    %c0_i32_0 = arith.constant 0 : i32
    return %arg0, %c0_i32 : i32, i32
  }
}

</mosaic_0001>

<bundles_post_ra>
// kernel: tpu_custom_call.1
= control target key start
LH: loop header
LB: loop body
LE: loop exit
PB: predicated region body
PF: predicated region fallthrough
CT: control target
= control target key end

     0   :  { %7 = vsyncpa [#allocation3], 0  ;;  %s734_s0 = inlined_call_operand.hbm [shape: f32[20,128], index: 0, kind: input, shape index: {}]   ;;  %s735_s1 = inlined_call_operand.hbm [shape: f32[20,256], index: 1, kind: input, shape index: {}]   ;;  %s736_s2 = inlined_call_operand.hbm [shape: f32[20,256], index: 2, kind: output, shape index: {}]  }
   0x1   :  { %9 = vsyncpa [#allocation3 + $0x1], 0 }
   0x2   :  { %10 = vsyncpa [#allocation6], 0 }
   0x3   :  { %12 = vsyncpa [#allocation6 + $0x1], 0 }
   0x4   :  { %13 = vsyncpa [#allocation4], 0 }
   0x5   :  { %15 = vsyncpa [#allocation4 + $0x1], 0  ;;  %s532_s9 = smov 0   ;;  %s534_s10 = smov 0  }
   0x6   :  { %s536_s11 = smov 0   ;;  %s538_s12 = smov 0  }
   0x7 LB: > { %s553_s13 = sadd.s32 4294967295, %s512_s12   ;;  %s312_s14 = sadd.s32 4294967294, %s512_s12   ;;  %s512_s12 = sphi %s538_s12, %s754_s12   ;;  %s508_s11 = sphi %s536_s11, %s753_s11   ;;  %s504_s10 = sphi %s534_s10, %s752_s10   ;;  %s500_s9 = sphi %s532_s9, %s751_s9  }
   0x8   : > { %s557_s15 = sadd.s32 1, %s512_s12   ;;  %s28_s16 = sadd.s32 1, %s508_s11 }
   0x9   : > { %s25_s17 = ssub.s32 %s512_s12, %s557_s15  ;;  %p35_p0 = scmp.ne.s32.totalorder %s508_s11, %s504_s10 }
   0xa   : > { %p26_p1 = scmp.eq.s32.totalorder %s25_s17, 0  ;;  %p36_p2 = scmp.eq.s32.totalorder %s512_s12, 0 }
   0xb   : > { %p41_p3 = scmp.ne.s32.totalorder %s504_s10, %s500_s9  ;;  %p42_p4 = scmp.eq.s32.totalorder %s553_s13, 0 }
   0xc   : > { %s569_s18 = scalar_select %p26_p1, %s508_s11, %s28_s16  }
   0xd   : > { %p571_p5 = por %p36_p2, %p35_p0  ;;  %p575_p6 = por %p42_p4, %p41_p3 }
   0xe   : > { %p91_p7 = scmp.eq.s32.totalorder %s553_s13, 2  ;;  %p97_p8 = scmp.eq.s32.totalorder %s312_s14, 2 }
   0xf   : > { %s740_s20 = scalar_select %p575_p6, 1, 0 }
  0x10   : > { %p348_p9 = scmp.lt.s32.totalorder %s512_s12, 3  ;;  %p581_p10 = por %p91_p7, %p35_p0 }
  0x11   : > { %p585_p11 = por %p97_p8, %p41_p3  ;;  %s590_s23 = sand.u32 1, %s508_s11  }
  0x12   : > { %s741_s21 = scalar_select %p581_p10, 1, 0 }
  0x13   : > { %s742_s22 = scalar_select %p585_p11, 1, 0 }
  0x14   : > { %s316_s24 = sshll.u32 %s512_s12, 7  ;;  %s315_s25 = sshll.u32 %s590_s23, 3 }
  0x15   : > { %s597_s28 = scalar_lea.hbm %s734_s0, %s316_s24  ;;  %s121_s29 = scalar_lea.vmem [#allocation2], %s315_s25 }
  0x16   : > { %s128_s30 = sshll.u32 %s121_s29, 4  ;;  %p601_p12 = pnand %p348_p9, %p571_p5  ;;  %s605_s30 = int_to_ptr.vmem [resolvable:$true] %s128_s30 }
  0x17   : > { %s118_s4 = scalar_lea.sflag [#allocation3], %s590_s23  ;;  %s382_s5 = scalar_lea.hbm %s597_s28, 128 }
  0x18   : > { %p383_p1 = scmp.ne.s32.totalorder %s597_s28, %s382_s5  ;;  %p384_p2 = pneg %p601_p12 }
  0x19   : > { %s387_s8 = scalar_lea.hbm %s734_s0, 384  ;;  %p388_p5 = scmp.lt.u32.totalorder %s597_s28, %s734_s0 }
  0x1a   : > { %p385_p3 = pnand %p384_p2, %p383_p1  ;;  %p389_p7 = scmp.lt.u32.totalorder %s387_s8, %s382_s5 }
  0x1b   : > { %p391_p9 = scmp.lt.u32.totalorder %s382_s5, %s597_s28 }
  0x1c   : > { %p386_p4 = pneg %p385_p3  ;;  %p390_p8 = por %p389_p7, %p388_p5 }
  0x1e   : > { %p392_p13 = por %p391_p9, %p390_p8 }
  0x20   : > { %p393_p0 = pnand %p392_p13, %p386_p4 }
  0x22   : > { %396 = shalt.err (!%p393_p0)
}
  0x23   : > { %s397_s17 = scalar_lea.vmem %s605_s30, 128  ;;  %s514_s19 = smov [#allocation2]  }
  0x24   : > { %p398_p1 = scmp.ne.s32.totalorder %s605_s30, %s397_s17  ;;  %s402_s24 = sshll.u32 %s514_s19, 4  ;;  %s403_s24 = int_to_ptr.vmem [resolvable:$false] %s402_s24 }
  0x25   : > { %s404_s25 = scalar_lea.vmem %s403_s24, 256  ;;  %p405_p10 = scmp.lt.s32.totalorder %s605_s30, %s403_s24 }
  0x26   : > { %p400_p3 = pnand %p398_p1, %p384_p2  ;;  %p406_p5 = scmp.lt.s32.totalorder %s404_s25, %s397_s17 }
  0x28   : > { %p401_p11 = pneg %p400_p3  ;;  %p407_p7 = por %p406_p5, %p405_p10 }
  0x2a   : > { %p408_p8 = pnand %p407_p7, %p401_p11 }
  0x2c   : > { %411 = shalt.err (!%p408_p8)
}
  0x2d   : > { %340 = dma.hbm_to_vmem [thread:$0]  (!%p601_p12), %s597_s28, 128, %s605_s30, %s118_s4  }
  0x2e   : > { %p744_p13 = scmp.lt.s32.totalorder %s512_s12, 4  ;;  %p745_p0 = scmp.ge.s32.totalorder %s512_s12, 1 }
  0x2f   : > { %s317_s27 = sshll.u32 %s590_s23, 4  ;;  %s329_s29 = sshll.u32 %s512_s12, 8 }
  0x30   : > { %p639_p4 = pnand %p745_p0, %p744_p13  ;;  %s648_s7 = scalar_lea.hbm %s735_s1, %s329_s29 }
  0x31   : > { %s139_s8 = scalar_lea.vmem [#allocation5], %s317_s27  ;;  %s136_s28 = scalar_lea.sflag [#allocation6], %s590_s23 }
  0x32   : > { %s746_s26 = scalar_select %p639_p4, 1, 0 }
  0x33   : > { %s147_s14 = sshll.u32 %s139_s8, 4  ;;  %s412_s30 = scalar_lea.hbm %s648_s7, 256  ;;  %s148_s14 = int_to_ptr.vmem [resolvable:$true] %s147_s14 }
  0x34   : > { %p413_p10 = scmp.ne.s32.totalorder %s648_s7, %s412_s30  ;;  %s417_s17 = scalar_lea.hbm %s735_s1, 768 }
  0x35   : > { %p418_p1 = scmp.lt.u32.totalorder %s648_s7, %s735_s1  ;;  %p419_p3 = scmp.lt.u32.totalorder %s417_s17, %s412_s30 }
  0x36   : > { %p415_p11 = pnand %p413_p10, %p384_p2  ;;  %p421_p7 = scmp.lt.u32.totalorder %s412_s30, %s648_s7 }
  0x37   : > { %p420_p5 = por %p419_p3, %p418_p1 }
  0x38   : > { %p416_p9 = pneg %p415_p11 }
  0x39   : > { %p422_p8 = por %p421_p7, %p420_p5 }
  0x3b   : > { %p423_p13 = pnand %p422_p8, %p416_p9 }
  0x3d   : > { %426 = shalt.err (!%p423_p13)
}
  0x3e   : > { %s427_s23 = scalar_lea.vmem %s148_s14, 256  ;;  %s515_s25 = smov [#allocation5]  }
  0x3f   : > { %p428_p0 = scmp.ne.s32.totalorder %s148_s14, %s427_s23  ;;  %s432_s27 = sshll.u32 %s515_s25, 4  ;;  %s433_s27 = int_to_ptr.vmem [resolvable:$false] %s432_s27 }
  0x40   : > { %s434_s29 = scalar_lea.vmem %s433_s27, 512  ;;  %p435_p6 = scmp.lt.s32.totalorder %s148_s14, %s433_s27 }
  0x41   : > { %p430_p10 = pnand %p428_p0, %p384_p2  ;;  %p436_p4 = scmp.lt.s32.totalorder %s434_s29, %s427_s23 }
  0x43   : > { %p431_p11 = pneg %p430_p10  ;;  %p437_p1 = por %p436_p4, %p435_p6 }
  0x45   : > { %p438_p3 = pnand %p437_p1, %p431_p11 }
  0x47   : > { %441 = shalt.err (!%p438_p3)
}
  0x48   : > { %343 = dma.hbm_to_vmem [thread:$0]  (!%p601_p12), %s648_s7, 256, %s148_s14, %s136_s28  }
  0x49   : > { %p747_p9 = scmp.ne.s32.totalorder %s746_s26, 0 }
  0x4a   : > { %s673_s5 = sand.u32 (!%p747_p9), 1, %s504_s10   ;;  %p748_p2 = scmp.ne.s32.totalorder (!%p747_p9), %s740_s20, 0 }
  0x4b   : > { %156 = sbr.rel (%p747_p9) target bundleno = 112 (0x70), region = 28  ;;  %s321_s6 = sshll.u32 (!%p747_p9), %s673_s5, 3 }
  0x4c   : > { %s159_s8 = scalar_lea.sflag (!%p747_p9), [#allocation3], %s673_s5  ;;  %s162_s30 = scalar_lea.vmem (!%p747_p9), [#allocation2], %s321_s6 }
  0x52   : > { %487 = dma.done.wait (%p748_p2), %s159_s8, 128  }
  0x53   : > { %489 = vsyncadd (%p748_p2), %s159_s8, 4294967168  ;;  %s322_s3 = sshll.u32 %s673_s5, 4  ;;  %s168_s26 = scalar_lea.sflag [#allocation6], %s673_s5 }
  0x54   : > { %s171_s7 = scalar_lea.vmem [#allocation5], %s322_s3 }
  0x55   : > { %491 = dma.done.wait (%p748_p2), %s168_s26, 256  }
  0x56   : > { %493 = vsyncadd (%p748_p2), %s168_s26, 4294967040  ;;  %s196_s14 = scalar_lea.vmem [#allocation7], %s322_s3  ;;  %s330_s4 = sshll.u32 %s553_s13, 8  ;;  %v197_v0 = vld [vmem:[%s162_s30] sm:$0xff]  ;;  %v198_v1 = vld [vmem:[%s171_s7] sm:$0xff] }
  0x57   : > { %s219_s28 = sshll.u32 %s196_s14, 4  ;;  %v201_v2 = vld [vmem:[%s171_s7 + $0x8] sm:$0xff]  ;;  %v199_v3 = vadd.f32 %v198_v1, %v197_v0  ;;  %s693_s20 = scalar_lea.hbm %s736_s2, %s330_s4  ;;  %s688_s28 = int_to_ptr.vmem [resolvable:$true] %s219_s28 }
  0x58   : > { %v202_v4 = vadd.f32 %v201_v2, %v197_v0  ;;  %s205_s19 = scalar_lea.sflag [#allocation4], %s673_s5  ;;  %s442_s24 = scalar_lea.vmem %s688_s28, 256 }
  0x59   : > { %200 = vst [vmem:[%s196_s14] sm:$0xff] %v199_v3  ;;  %p443_p6 = scmp.ne.s32.totalorder %s688_s28, %s442_s24  ;;  %p749_p12 = scmp.ne.s32.totalorder %s741_s21, 0 }
  0x5a   : > { %203 = vst [vmem:[%s196_s14 + $0x8] sm:$0xff] %v202_v4  ;;  %s516_s13 = smov [#allocation7]  }
  0x5b   : > { %p444_p4 = pnand %p443_p6, %p749_p12  ;;  %s446_s23 = sshll.u32 %s516_s13, 4  ;;  %s447_s23 = int_to_ptr.vmem [resolvable:$false] %s446_s23 }
  0x5c   : > { %s448_s25 = scalar_lea.vmem %s447_s23, 512  ;;  %p449_p7 = scmp.lt.s32.totalorder %s688_s28, %s447_s23 }
  0x5d   : > { %p445_p5 = pneg %p444_p4  ;;  %p450_p8 = scmp.lt.s32.totalorder %s448_s25, %s442_s24 }
  0x5f   : > { %p451_p13 = por %p450_p8, %p449_p7 }
  0x61   : > { %p452_p0 = pnand %p451_p13, %p445_p5 }
  0x63   : > { %455 = shalt.err (!%p452_p0)
}
  0x64   : > { %s456_s27 = scalar_lea.hbm %s693_s20, 256  ;;  %s460_s6 = scalar_lea.hbm %s736_s2, 768 }
  0x65   : > { %p457_p10 = scmp.ne.s32.totalorder %s693_s20, %s456_s27  ;;  %p461_p3 = scmp.lt.u32.totalorder %s693_s20, %s736_s2 }
  0x66   : > { %p462_p9 = scmp.lt.u32.totalorder %s460_s6, %s456_s27  ;;  %p464_p6 = scmp.lt.u32.totalorder %s456_s27, %s693_s20 }
  0x67   : > { %p458_p11 = pnand %p457_p10, %p749_p12 }
  0x68   : > { %p463_p2 = por %p462_p9, %p461_p3 }
  0x69   : > { %p459_p1 = pneg %p458_p11 }
  0x6a   : > { %p465_p4 = por %p464_p6, %p463_p2 }
  0x6c   : > { %p466_p5 = pnand %p465_p4, %p459_p1 }
  0x6e   : > { %469 = shalt.err (!%p466_p5)
}
  0x6f   : > { %335 = dma.vmem_to_hbm [thread:$0]  (%p749_p12), %s688_s28, 256, %s693_s20, %s205_s19  }
  0x70 PF: > { %p349_p7 = scmp.ge.s32.totalorder %s512_s12, 2  ;;  %s231_s3 = sand.u32 1, %s500_s9  }
  0x71   : > { %p750_p8 = scmp.ne.s32.totalorder %s742_s22, 0  ;;  %s232_s26 = scalar_lea.sflag [#allocation4], %s231_s3 }
  0x73   : > { %p345_p13 = pnand %p349_p7, %p750_p8 }
  0x75   : > { %495 = dma.done.wait (!%p345_p13), %s232_s26, 256  }
  0x76   : > { %497 = vsyncadd (!%p345_p13), %s232_s26, 4294967040  ;;  %p18_p0 = scmp.ge.s32.totalorder %s557_s15, 5   ;;  %s751_s9 = smov %s504_s10 }
  0x77   : > { %s752_s10 = smov %s508_s11  ;;  %s753_s11 = smov %s569_s18 }
  0x78   : > { %s754_s12 = smov %s557_s15  ;;  %20 = sbr.rel (!%p18_p0) target bundleno = 7 (0x7), region = 86 }
  0x7f   :  { %237 = vsyncpa [#allocation3], 1 }
  0x80   :  { %239 = vsyncpa [#allocation3 + $0x1], 1 }
  0x81   :  { %240 = vsyncpa [#allocation6], 1 }
  0x82   :  { %242 = vsyncpa [#allocation6 + $0x1], 1 }
  0x83   :  { %243 = vsyncpa [#allocation4], 1 }
  0x84   :  { %245 = vsyncpa [#allocation4 + $0x1], 1 }

</bundles_post_ra>
